<compile_context>
chip_gen: v7x
topology: tpu7x:2x2x1
jax: 0.10.0
libtpu: 0.0.40
codegen_flags: <defaults>
</compile_context>

<pallas_src>
import functools

import jax
import jax.numpy as jnp
from jax.experimental import pallas as pl
from jax.experimental.pallas import tpu as pltpu

EPS = 1e-5

# Matmul operand dtype (accumulation stays f32).  bf16 hits native MXU speed on
# v6e/v7x; set to jnp.float32 for ~1e-5 parity with the f32 PyTorch module
# (then tighten the test tolerance accordingly).
MXU_DTYPE = jnp.bfloat16
# dtype of the only HBM-round-tripped intermediate (y2 pre-BN).
INTER_DTYPE = jnp.bfloat16


def _vmem_limit_bytes():
    """Generation-aware scoped-VMEM limit (~3/4 of physical, capped at 96 MiB)."""
    cap = 64 * 1024 * 1024  # conservative fallback (v7x physical VMEM)
    try:
        info = pltpu.get_tpu_info()
        cap = int(getattr(info, "vmem_capacity_bytes", cap))
    except Exception:
        pass
    return int(min(cap * 3 // 4, 96 * 1024 * 1024))


def _pick_hw_tile(hw):
    """Largest lane-aligned tile that divides H*W (else the full extent)."""
    for t in (16384, 8192, 4096, 2048, 1024, 512, 256, 128):
        if hw % t == 0:
            return t
    return hw


# --------------------------------------------------------------------------
# Stage 1 (stats only): 1x1 conv as a channel matmul; emit per-tile BN1
# partial [sum, sum_sq].  The activation itself is NOT written to HBM.
# --------------------------------------------------------------------------
def conv1x1_stats_kernel(x_ref, w_ref, ps_ref):
    # x_ref : (1, Cin, T) f32   w_ref : (Cmid, Cin) bf16   ps_ref: (1, Cmid, 2) f32
    x = x_ref[0].astype(w_ref.dtype)                        # (Cin, T), lane-dense
    y = jnp.dot(w_ref[...], x, preferred_element_type=jnp.float32)   # (Cmid, T) f32
    s = jnp.sum(y, axis=1, keepdims=True)                   # (Cmid, 1)
    ss = jnp.sum(y * y, axis=1, keepdims=True)              # (Cmid, 1)
    ps_ref[0] = jnp.concatenate([s, ss], axis=1)            # (Cmid, 2) tiny store


# --------------------------------------------------------------------------
# Stage 2: recompute 1x1 conv, fused BN1+ReLU, roll-based 3x3 conv
# (9 accumulated taps on the flat lane-dense layout), BN2 partial stats.
# --------------------------------------------------------------------------
def conv3x3_stats_kernel(x_ref, w1_ref, s1_ref, b1_ref, w2_ref, y2_ref, ps_ref,
                         *, h, w):
    # x_ref : (1, Cin, H*W) f32     w1_ref: (Cmid, Cin) bf16
    # s1/b1 : (Cmid, 1) f32 folded BN1 scale/shift
    # w2_ref: (9, Cout, Cmid) bf16  (tap k = (dy+1)*3 + (dx+1))
    # y2_ref: (1, Cout, H*W) bf16   ps_ref: (1, Cout, 2) f32
    cmid = w1_ref.shape[0]
    cout = w2_ref.shape[1]
    hw = x_ref.shape[2]

    # Recompute the cheap 1x1 conv (identical op to stage 1 -> stats match).
    x = x_ref[0].astype(w1_ref.dtype)                                   # (Cin, HW)
    y1 = jnp.dot(w1_ref[...], x, preferred_element_type=jnp.float32)    # (Cmid, HW)
    # BN1 + ReLU as a single folded per-channel FMA (f32).
    a = jnp.maximum(y1 * s1_ref[...] + b1_ref[...], 0.0)                # (Cmid, HW)

    # Flat lane index -> border masks (no division needed for the row masks).
    lane = jax.lax.broadcasted_iota(jnp.int32, (cmid, hw), 1)
    col = lane % w

    acc = jnp.zeros((cout, hw), jnp.float32)
    for dy in (-1, 0, 1):
        for dx in (-1, 0, 1):
            k = (dy + 1) * 3 + (dx + 1)
            # sa[p] = a[p + dy*W + dx]  (flat roll; wrapped entries masked below)
            shift = (-(dy * w + dx)) % hw
            sa = pltpu.roll(a, shift, axis=1) if shift else a
            conds = []
            if dy == -1:
                conds.append(lane >= w)              # top output row invalid
            elif dy == 1:
                conds.append(lane < (h - 1) * w)     # bottom output row invalid
            if dx == -1:
                conds.append(col >= 1)               # left column invalid
            elif dx == 1:
                conds.append(col <= w - 2)           # right column invalid
            if conds:
                m = conds[0]
                for c in conds[1:]:
                    m = jnp.logical_and(m, c)
                sa = jnp.where(m, sa, jnp.zeros_like(sa))
            acc = acc + jnp.dot(w2_ref[k], sa.astype(w2_ref.dtype),
                                preferred_element_type=jnp.float32)     # (Cout, HW)

    y2_ref[0] = acc.astype(y2_ref.dtype)                                # bf16 store
    s = jnp.sum(acc, axis=1, keepdims=True)
    ss = jnp.sum(acc * acc, axis=1, keepdims=True)
    ps_ref[0] = jnp.concatenate([s, ss], axis=1)                        # (Cout, 2)


# --------------------------------------------------------------------------
# Stage 3: BN2 + ReLU (folded per-channel scale/shift FMA), lane-dense tiles.
# --------------------------------------------------------------------------
def bn_relu_kernel(y_ref, s_ref, b_ref, o_ref):
    y = y_ref[0].astype(jnp.float32)
    o_ref[0] = jnp.maximum(y * s_ref[...] + b_ref[...], 0.0)


def _fold_bn(partials, count, gamma, beta):
    """partials: (tiles, C, 2) -> per-channel (scale, shift) as (C, 1) f32."""
    sums = jnp.sum(partials, axis=0)                            # (C, 2)
    mean = sums[:, 0] / count
    var = jnp.maximum(sums[:, 1] / count - mean * mean, 0.0)    # biased variance
    inv = jax.lax.rsqrt(var + EPS)
    scale = gamma * inv
    shift = beta - mean * scale
    c = gamma.shape[0]
    return scale.reshape(c, 1), shift.reshape(c, 1)


def double_conv(x_nchw, params):
    # Conv biases b1/b2 are accepted for interface parity but are mathematically
    # cancelled by train-mode BatchNorm mean subtraction -> not added in-kernel.
    # (If eval-mode running stats were used, the biases would have to be re-added.)
    (w1, b1, g1, be1, w2, b2, g2, be2) = params
    del b1, b2
    n, cin, h, w = x_nchw.shape
    mid_ch = w1.shape[0]
    out_ch = w2.shape[0]
    hw = h * w
    p = n * hw
    thw = _pick_hw_tile(hw)
    n_t = hw // thw

    vmem = _vmem_limit_bytes()
    cp2 = pltpu.CompilerParams(dimension_semantics=("parallel", "parallel"),
                               vmem_limit_bytes=vmem)
    cp1 = pltpu.CompilerParams(dimension_semantics=("parallel",),
                               vmem_limit_bytes=vmem)

    # NCHW -> (N, C, H*W): contiguous reshape, spatial on lanes, no transpose.
    x3 = x_nchw.reshape(n, cin, hw)
    # Weights pre-cast once in the wrapper (no per-grid-step casts).
    w1m = w1.reshape(mid_ch, cin).astype(MXU_DTYPE)                     # (Cmid, Cin)
    # Per-tap slabs (3,3,Cout,Cmid) -> (9, Cout, Cmid), tap k = (dy+1)*3+(dx+1).
    w2s = jnp.transpose(w2, (2, 3, 0, 1)).reshape(9, out_ch, mid_ch).astype(MXU_DTYPE)

    # ---- stage 1: stats-only 1x1 conv (no activation written to HBM) --------
    ps1 = pl.pallas_call(
        conv1x1_stats_kernel,
        grid=(n, n_t),
        in_specs=[
            pl.BlockSpec((1, cin, thw), lambda i, t: (i, 0, t)),
            pl.BlockSpec((mid_ch, cin), lambda i, t: (0, 0)),
        ],
        out_specs=pl.BlockSpec((1, mid_ch, 2),
                               lambda i, t, _nt=n_t: (i * _nt + t, 0, 0)),
        out_shape=jax.ShapeDtypeStruct((n * n_t, mid_ch, 2), jnp.float32),
        compiler_params=cp2,
    )(x3, w1m)

    scale1, shift1 = _fold_bn(ps1, p, g1, be1)

    # ---- stage 2: recompute 1x1, BN1+ReLU, roll-based 3x3, BN2 partials -----
    # TODO(synk): for very large H*W on v7x, add 1-row-halo spatial tiling here.
    kern2 = functools.partial(conv3x3_stats_kernel, h=h, w=w)
    y2_pre, ps2 = pl.pallas_call(
        kern2,
        grid=(n,),
        in_specs=[
            pl.BlockSpec((1, cin, hw), lambda i: (i, 0, 0)),
            pl.BlockSpec((mid_ch, cin), lambda i: (0, 0)),
            pl.BlockSpec((mid_ch, 1), lambda i: (0, 0)),
            pl.BlockSpec((mid_ch, 1), lambda i: (0, 0)),
            pl.BlockSpec((9, out_ch, mid_ch), lambda i: (0, 0, 0)),
        ],
        out_specs=(
            pl.BlockSpec((1, out_ch, hw), lambda i: (i, 0, 0)),
            pl.BlockSpec((1, out_ch, 2), lambda i: (i, 0, 0)),
        ),
        out_shape=(
            jax.ShapeDtypeStruct((n, out_ch, hw), INTER_DTYPE),
            jax.ShapeDtypeStruct((n, out_ch, 2), jnp.float32),
        ),
        compiler_params=cp1,
    )(x3, w1m, scale1, shift1, w2s)

    scale2, shift2 = _fold_bn(ps2, p, g2, be2)

    # ---- stage 3: BN2 + ReLU -------------------------------------------------
    out = pl.pallas_call(
        bn_relu_kernel,
        grid=(n, n_t),
        in_specs=[
            pl.BlockSpec((1, out_ch, thw), lambda i, t: (i, 0, t)),
            pl.BlockSpec((out_ch, 1), lambda i, t: (0, 0)),
            pl.BlockSpec((out_ch, 1), lambda i, t: (0, 0)),
        ],
        out_specs=pl.BlockSpec((1, out_ch, thw), lambda i, t: (i, 0, t)),
        out_shape=jax.ShapeDtypeStruct((n, out_ch, hw), jnp.float32),
        compiler_params=cp2,
    )(y2_pre, scale2, shift2)

    # (N, Cout, H*W) -> NCHW: contiguous reshape, free.
    return out.reshape(n, out_ch, h, w)


def _reference(x_nchw, params):
    # Pure-JAX f32 reference (NCHW convs + train-mode BN + ReLU) for verification.
    (w1, b1, g1, be1, w2, b2, g2, be2) = params

    def bn_relu(y, g, be):
        mean = jnp.mean(y, axis=(0, 2, 3), keepdims=True)
        var = jnp.mean((y - mean) ** 2, axis=(0, 2, 3), keepdims=True)
        yhat = (y - mean) * jax.lax.rsqrt(var + EPS)
        return jnp.maximum(yhat * g[None, :, None, None] + be[None, :, None, None], 0.0)

    dn = jax.lax.conv_dimension_numbers(x_nchw.shape, w1.shape, ("NCHW", "OIHW", "NCHW"))
    y = jax.lax.conv_general_dilated(x_nchw, w1, (1, 1), "VALID", dimension_numbers=dn)
    y = y + b1[None, :, None, None]
    y = bn_relu(y, g1, be1)
    dn2 = jax.lax.conv_dimension_numbers(y.shape, w2.shape, ("NCHW", "OIHW", "NCHW"))
    y = jax.lax.conv_general_dilated(y, w2, (1, 1), ((1, 1), (1, 1)), dimension_numbers=dn2)
    y = y + b2[None, :, None, None]
    y = bn_relu(y, g2, be2)
    return y


if __name__ == "__main__":
    in_ch, mid_ch, out_ch = 4, 8, 8
    N, H, W = 2, 16, 16
    total_in = in_ch + mid_ch  # the first Conv2d takes in_ch + mid_ch channels

    key = jax.random.PRNGKey(0)
    ks = jax.random.split(key, 5)
    x = jax.random.normal(ks[0], (N, total_in, H, W), jnp.float32)

    w1 = 0.1 * jax.random.normal(ks[1], (mid_ch, total_in, 1, 1), jnp.float32)
    b1 = 0.1 * jax.random.normal(ks[2], (mid_ch,), jnp.float32)
    g1 = jnp.ones((mid_ch,), jnp.float32)
    be1 = jnp.zeros((mid_ch,), jnp.float32)

    w2 = 0.1 * jax.random.normal(ks[3], (out_ch, mid_ch, 3, 3), jnp.float32)
    b2 = 0.1 * jax.random.normal(ks[4], (out_ch,), jnp.float32)
    g2 = jnp.ones((out_ch,), jnp.float32)
    be2 = jnp.zeros((out_ch,), jnp.float32)

    params = (w1, b1, g1, be1, w2, b2, g2, be2)

    out = jax.jit(double_conv)(x, params)
    out = jax.block_until_ready(out)

    ref = _reference(x, params)
    assert out.shape == (N, out_ch, H, W)
    max_err = float(jnp.max(jnp.abs(out - ref)))
    # bf16 MXU operands + bf16 inter-stage intermediate vs an all-f32 reference:
    # agreement is ~1e-2 level (set MXU_DTYPE/INTER_DTYPE to f32 for ~1e-5 parity).
    assert jnp.allclose(out, ref, rtol=5e-2, atol=5e-2), max_err

    print("KERNEL_OK")
</pallas_src>

<mosaic_0001>
module attributes {stable_mosaic.version = 11 : i64} {
  func.func @conv1x1_stats_kernel(%arg0: i32, %arg1: i32, %arg2: memref<1x12x256xf32, #tpu.memory_space<vmem>>, %arg3: memref<8x12xbf16, #tpu.memory_space<vmem>>, %arg4: memref<1x8x2xf32, #tpu.memory_space<vmem>>) attributes {dimension_semantics = [#tpu.dimension_semantics<parallel>, #tpu.dimension_semantics<parallel>], iteration_bounds = array<i64: 2, 1>, scalar_prefetch = 0 : i64, scratch_operands = 0 : i64, tpu.core_type = #tpu.core_type<tc>, window_params = [{transform_indices = @transform_0, window_bounds = array<i64: 1, 12, 256>}, {pipeline_mode = #tpu.pipeline_mode<synchronous>, transform_indices = @transform_1, window_bounds = array<i64: 8, 12>}, {transform_indices = @transform_2, window_bounds = array<i64: 1, 8, 2>}]} {
    %c0 = arith.constant 0 : index
    %c0_0 = arith.constant 0 : index
    %c0_1 = arith.constant 0 : index
    %0 = vector.load %arg2[%c0, %c0_0, %c0_1] : memref<1x12x256xf32, #tpu.memory_space<vmem>>, vector<1x12x256xf32>
    %1 = vector.shape_cast %0 : vector<1x12x256xf32> to vector<12x256xf32>
    %2 = arith.truncf %1 : vector<12x256xf32> to vector<12x256xbf16>
    %c0_2 = arith.constant 0 : index
    %c0_3 = arith.constant 0 : index
    %3 = vector.load %arg3[%c0_2, %c0_3] : memref<8x12xbf16, #tpu.memory_space<vmem>>, vector<8x12xbf16>
    %cst = arith.constant dense<0.000000e+00> : vector<8x256xf32>
    %4 = tpu.matmul %3, %2, %cst {dimension_numbers = #tpu.dot_dimension_numbers<[1], [0], [0], [1], [0, 0, 1, 1], [], []>} : vector<8x12xbf16>, vector<12x256xbf16>, vector<8x256xf32> -> vector<8x256xf32>
    %cst_4 = arith.constant dense<0.000000e+00> : vector<8xf32>
    %5 = vector.multi_reduction <add>, %4, %cst_4 [1] : vector<8x256xf32> to vector<8xf32>
    %6 = vector.shape_cast %5 : vector<8xf32> to vector<8x1xf32>
    %7 = arith.mulf %4, %4 : vector<8x256xf32>
    %cst_5 = arith.constant dense<0.000000e+00> : vector<8xf32>
    %8 = vector.multi_reduction <add>, %7, %cst_5 [1] : vector<8x256xf32> to vector<8xf32>
    %9 = vector.shape_cast %8 : vector<8xf32> to vector<8x1xf32>
    %10 = tpu.concatenate %6, %9 in 1 : vector<8x1xf32>, vector<8x1xf32> -> vector<8x2xf32>
    %c0_6 = arith.constant 0 : index
    %c0_7 = arith.constant 0 : index
    %c0_8 = arith.constant 0 : index
    %11 = vector.load %arg4[%c0_6, %c0_7, %c0_8] : memref<1x8x2xf32, #tpu.memory_space<vmem>>, vector<1x8x2xf32>
    %12 = vector.shape_cast %11 : vector<1x8x2xf32> to vector<8x2xf32>
    %13 = vector.shape_cast %10 : vector<8x2xf32> to vector<1x8x2xf32>
    tpu.vector_store %arg4[%c0_6, %c0_7, %c0_8], %13 {strides = array<i32>} : memref<1x8x2xf32, #tpu.memory_space<vmem>>, vector<1x8x2xf32>,
    return
  }
  func.func @transform_0(%arg0: i32, %arg1: i32) -> (i32, i32, i32) {
    %c0_i32 = arith.constant 0 : i32
    %c0_i32_0 = arith.constant 0 : i32
    return %arg0, %c0_i32, %arg1 : i32, i32, i32
  }
  func.func @transform_1(%arg0: i32, %arg1: i32) -> (i32, i32) {
    %c0_i32 = arith.constant 0 : i32
    %c0_i32_0 = arith.constant 0 : i32
    %c0_i32_1 = arith.constant 0 : i32
    return %c0_i32, %c0_i32_0 : i32, i32
  }
  func.func @transform_2(%arg0: i32, %arg1: i32) -> (i32, i32, i32) {
    %c1_i32 = arith.constant 1 : i32
    %0 = arith.muli %arg0, %c1_i32 : i32
    %1 = arith.addi %0, %arg1 : i32
    %c0_i32 = arith.constant 0 : i32
    %c0_i32_0 = arith.constant 0 : i32
    %c0_i32_1 = arith.constant 0 : i32
    return %1, %c0_i32, %c0_i32_0 : i32, i32, i32
  }
}

module attributes {stable_mosaic.version = 11 : i64} {
  func.func @conv3x3_stats_kernel(%arg0: i32, %arg1: memref<1x12x256xf32, #tpu.memory_space<vmem>>, %arg2: memref<8x12xbf16, #tpu.memory_space<vmem>>, %arg3: memref<8x1xf32, #tpu.memory_space<vmem>>, %arg4: memref<8x1xf32, #tpu.memory_space<vmem>>, %arg5: memref<9x8x8xbf16, #tpu.memory_space<vmem>>, %arg6: memref<1x8x256xbf16, #tpu.memory_space<vmem>>, %arg7: memref<1x8x2xf32, #tpu.memory_space<vmem>>) attributes {dimension_semantics = [#tpu.dimension_semantics<parallel>], iteration_bounds = array<i64: 2>, scalar_prefetch = 0 : i64, scratch_operands = 0 : i64, tpu.core_type = #tpu.core_type<tc>, window_params = [{transform_indices = @transform_0, window_bounds = array<i64: 1, 12, 256>}, {pipeline_mode = #tpu.pipeline_mode<synchronous>, transform_indices = @transform_1, window_bounds = array<i64: 8, 12>}, {pipeline_mode = #tpu.pipeline_mode<synchronous>, transform_indices = @transform_2, window_bounds = array<i64: 8, 1>}, {pipeline_mode = #tpu.pipeline_mode<synchronous>, transform_indices = @transform_3, window_bounds = array<i64: 8, 1>}, {pipeline_mode = #tpu.pipeline_mode<synchronous>, transform_indices = @transform_4, window_bounds = array<i64: 9, 8, 8>}, {transform_indices = @transform_5, window_bounds = array<i64: 1, 8, 256>}, {transform_indices = @transform_6, window_bounds = array<i64: 1, 8, 2>}]} {
    %c0 = arith.constant 0 : index
    %c0_0 = arith.constant 0 : index
    %c0_1 = arith.constant 0 : index
    %0 = vector.load %arg1[%c0, %c0_0, %c0_1] : memref<1x12x256xf32, #tpu.memory_space<vmem>>, vector<1x12x256xf32>
    %1 = vector.shape_cast %0 : vector<1x12x256xf32> to vector<12x256xf32>
    %2 = arith.truncf %1 : vector<12x256xf32> to vector<12x256xbf16>
    %c0_2 = arith.constant 0 : index
    %c0_3 = arith.constant 0 : index
    %3 = vector.load %arg2[%c0_2, %c0_3] : memref<8x12xbf16, #tpu.memory_space<vmem>>, vector<8x12xbf16>
    %cst = arith.constant dense<0.000000e+00> : vector<8x256xf32>
    %4 = tpu.matmul %3, %2, %cst {dimension_numbers = #tpu.dot_dimension_numbers<[1], [0], [0], [1], [0, 0, 1, 1], [], []>} : vector<8x12xbf16>, vector<12x256xbf16>, vector<8x256xf32> -> vector<8x256xf32>
    %c0_4 = arith.constant 0 : index
    %c0_5 = arith.constant 0 : index
    %5 = vector.load %arg3[%c0_4, %c0_5] : memref<8x1xf32, #tpu.memory_space<vmem>>, vector<8x1xf32>
    %6 = vector.broadcast %5 : vector<8x1xf32> to vector<8x256xf32>
    %7 = arith.mulf %4, %6 : vector<8x256xf32>
    %c0_6 = arith.constant 0 : index
    %c0_7 = arith.constant 0 : index
    %8 = vector.load %arg4[%c0_6, %c0_7] : memref<8x1xf32, #tpu.memory_space<vmem>>, vector<8x1xf32>
    %9 = vector.broadcast %8 : vector<8x1xf32> to vector<8x256xf32>
    %10 = arith.addf %7, %9 : vector<8x256xf32>
    %cst_8 = arith.constant 0.000000e+00 : f32
    %11 = vector.broadcast %cst_8 : f32 to vector<8x256xf32>
    %12 = arith.maximumf %10, %11 : vector<8x256xf32>
    %13 = tpu.iota {dimensions = array<i32: 1>} : vector<8x256xi32>
    %c16_i32 = arith.constant 16 : i32
    %c0_i32 = arith.constant 0 : i32
    %14 = arith.cmpi eq, %c16_i32, %c0_i32 : i32
    %c1_i32 = arith.constant 1 : i32
    %15 = arith.select %14, %c1_i32, %c16_i32 : i32
    %16 = vector.broadcast %15 : i32 to vector<8x256xi32>
    %17 = arith.remsi %13, %16 : vector<8x256xi32>
    %c0_i32_9 = arith.constant 0 : i32
    %18 = vector.broadcast %c0_i32_9 : i32 to vector<8x256xi32>
    %19 = arith.cmpi ne, %17, %18 : vector<8x256xi32>
    %c0_i32_10 = arith.constant 0 : i32
    %20 = vector.broadcast %c0_i32_10 : i32 to vector<8x256xi32>
    %21 = arith.cmpi slt, %17, %20 : vector<8x256xi32>
    %c0_i32_11 = arith.constant 0 : i32
    %22 = arith.cmpi slt, %15, %c0_i32_11 : i32
    %23 = vector.broadcast %22 : i1 to vector<8x256xi1>
    %24 = vector.broadcast %23 : vector<8x256xi1> to vector<8x256xi1>
    %25 = arith.xori %21, %24 : vector<8x256xi1>
    %26 = arith.andi %25, %19 : vector<8x256xi1>
    %27 = vector.broadcast %15 : i32 to vector<8x256xi32>
    %28 = arith.addi %17, %27 : vector<8x256xi32>
    %29 = arith.select %26, %28, %17 : vector<8x256xi1>, vector<8x256xi32>
    %cst_12 = arith.constant 0.000000e+00 : f32
    %30 = vector.broadcast %cst_12 : f32 to vector<8x256xf32>
    %c17_i32 = arith.constant 17 : i32
    %31 = tpu.dynamic_rotate %12 by %c17_i32 dim 1 : vector<8x256xf32>, i32 -> vector<8x256xf32>
    %c16_i32_13 = arith.constant 16 : i32
    %32 = vector.broadcast %c16_i32_13 : i32 to vector<8x256xi32>
    %33 = arith.cmpi sge, %13, %32 : vector<8x256xi32>
    %c1_i32_14 = arith.constant 1 : i32
    %34 = vector.broadcast %c1_i32_14 : i32 to vector<8x256xi32>
    %35 = arith.cmpi sge, %29, %34 : vector<8x256xi32>
    %36 = arith.andi %33, %35 : vector<8x256xi1>
    %cst_15 = arith.constant 0.000000e+00 : f32
    %37 = vector.broadcast %cst_15 : f32 to vector<8x256xf32>
    %38 = arith.select %36, %31, %37 : vector<8x256xi1>, vector<8x256xf32>
    %c0_16 = arith.constant 0 : index
    %c0_17 = arith.constant 0 : index
    %c0_18 = arith.constant 0 : index
    %39 = vector.load %arg5[%c0_16, %c0_17, %c0_18] : memref<9x8x8xbf16, #tpu.memory_space<vmem>>, vector<1x8x8xbf16>
    %40 = vector.shape_cast %39 : vector<1x8x8xbf16> to vector<8x8xbf16>
    %41 = arith.truncf %38 : vector<8x256xf32> to vector<8x256xbf16>
    %cst_19 = arith.constant dense<0.000000e+00> : vector<8x256xf32>
    %42 = tpu.matmul %40, %41, %cst_19 {dimension_numbers = #tpu.dot_dimension_numbers<[1], [0], [0], [1], [0, 0, 1, 1], [], []>} : vector<8x8xbf16>, vector<8x256xbf16>, vector<8x256xf32> -> vector<8x256xf32>
    %43 = arith.addf %30, %42 : vector<8x256xf32>
    %c16_i32_20 = arith.constant 16 : i32
    %44 = tpu.dynamic_rotate %12 by %c16_i32_20 dim 1 : vector<8x256xf32>, i32 -> vector<8x256xf32>
    %c16_i32_21 = arith.constant 16 : i32
    %45 = vector.broadcast %c16_i32_21 : i32 to vector<8x256xi32>
    %46 = arith.cmpi sge, %13, %45 : vector<8x256xi32>
    %cst_22 = arith.constant 0.000000e+00 : f32
    %47 = vector.broadcast %cst_22 : f32 to vector<8x256xf32>
    %48 = arith.select %46, %44, %47 : vector<8x256xi1>, vector<8x256xf32>
    %c1 = arith.constant 1 : index
    %c0_23 = arith.constant 0 : index
    %c0_24 = arith.constant 0 : index
    %49 = vector.load %arg5[%c1, %c0_23, %c0_24] : memref<9x8x8xbf16, #tpu.memory_space<vmem>>, vector<1x8x8xbf16>
    %50 = vector.shape_cast %49 : vector<1x8x8xbf16> to vector<8x8xbf16>
    %51 = arith.truncf %48 : vector<8x256xf32> to vector<8x256xbf16>
    %cst_25 = arith.constant dense<0.000000e+00> : vector<8x256xf32>
    %52 = tpu.matmul %50, %51, %cst_25 {dimension_numbers = #tpu.dot_dimension_numbers<[1], [0], [0], [1], [0, 0, 1, 1], [], []>} : vector<8x8xbf16>, vector<8x256xbf16>, vector<8x256xf32> -> vector<8x256xf32>
    %53 = arith.addf %43, %52 : vector<8x256xf32>
    %c15_i32 = arith.constant 15 : i32
    %54 = tpu.dynamic_rotate %12 by %c15_i32 dim 1 : vector<8x256xf32>, i32 -> vector<8x256xf32>
    %c16_i32_26 = arith.constant 16 : i32
    %55 = vector.broadcast %c16_i32_26 : i32 to vector<8x256xi32>
    %56 = arith.cmpi sge, %13, %55 : vector<8x256xi32>
    %c14_i32 = arith.constant 14 : i32
    %57 = vector.broadcast %c14_i32 : i32 to vector<8x256xi32>
    %58 = arith.cmpi sle, %29, %57 : vector<8x256xi32>
    %59 = arith.andi %56, %58 : vector<8x256xi1>
    %cst_27 = arith.constant 0.000000e+00 : f32
    %60 = vector.broadcast %cst_27 : f32 to vector<8x256xf32>
    %61 = arith.select %59, %54, %60 : vector<8x256xi1>, vector<8x256xf32>
    %c2 = arith.constant 2 : index
    %c0_28 = arith.constant 0 : index
    %c0_29 = arith.constant 0 : index
    %62 = vector.load %arg5[%c2, %c0_28, %c0_29] : memref<9x8x8xbf16, #tpu.memory_space<vmem>>, vector<1x8x8xbf16>
    %63 = vector.shape_cast %62 : vector<1x8x8xbf16> to vector<8x8xbf16>
    %64 = arith.truncf %61 : vector<8x256xf32> to vector<8x256xbf16>
    %cst_30 = arith.constant dense<0.000000e+00> : vector<8x256xf32>
    %65 = tpu.matmul %63, %64, %cst_30 {dimension_numbers = #tpu.dot_dimension_numbers<[1], [0], [0], [1], [0, 0, 1, 1], [], []>} : vector<8x8xbf16>, vector<8x256xbf16>, vector<8x256xf32> -> vector<8x256xf32>
    %66 = arith.addf %53, %65 : vector<8x256xf32>
    %c1_i32_31 = arith.constant 1 : i32
    %67 = tpu.dynamic_rotate %12 by %c1_i32_31 dim 1 : vector<8x256xf32>, i32 -> vector<8x256xf32>
    %c1_i32_32 = arith.constant 1 : i32
    %68 = vector.broadcast %c1_i32_32 : i32 to vector<8x256xi32>
    %69 = arith.cmpi sge, %29, %68 : vector<8x256xi32>
    %cst_33 = arith.constant 0.000000e+00 : f32
    %70 = vector.broadcast %cst_33 : f32 to vector<8x256xf32>
    %71 = arith.select %69, %67, %70 : vector<8x256xi1>, vector<8x256xf32>
    %c3 = arith.constant 3 : index
    %c0_34 = arith.constant 0 : index
    %c0_35 = arith.constant 0 : index
    %72 = vector.load %arg5[%c3, %c0_34, %c0_35] : memref<9x8x8xbf16, #tpu.memory_space<vmem>>, vector<1x8x8xbf16>
    %73 = vector.shape_cast %72 : vector<1x8x8xbf16> to vector<8x8xbf16>
    %74 = arith.truncf %71 : vector<8x256xf32> to vector<8x256xbf16>
    %cst_36 = arith.constant dense<0.000000e+00> : vector<8x256xf32>
    %75 = tpu.matmul %73, %74, %cst_36 {dimension_numbers = #tpu.dot_dimension_numbers<[1], [0], [0], [1], [0, 0, 1, 1], [], []>} : vector<8x8xbf16>, vector<8x256xbf16>, vector<8x256xf32> -> vector<8x256xf32>
    %76 = arith.addf %66, %75 : vector<8x256xf32>
    %c4 = arith.constant 4 : index
    %c0_37 = arith.constant 0 : index
    %c0_38 = arith.constant 0 : index
    %77 = vector.load %arg5[%c4, %c0_37, %c0_38] : memref<9x8x8xbf16, #tpu.memory_space<vmem>>, vector<1x8x8xbf16>
    %78 = vector.shape_cast %77 : vector<1x8x8xbf16> to vector<8x8xbf16>
    %79 = arith.truncf %12 : vector<8x256xf32> to vector<8x256xbf16>
    %cst_39 = arith.constant dense<0.000000e+00> : vector<8x256xf32>
    %80 = tpu.matmul %78, %79, %cst_39 {dimension_numbers = #tpu.dot_dimension_numbers<[1], [0], [0], [1], [0, 0, 1, 1], [], []>} : vector<8x8xbf16>, vector<8x256xbf16>, vector<8x256xf32> -> vector<8x256xf32>
    %81 = arith.addf %76, %80 : vector<8x256xf32>
    %c255_i32 = arith.constant 255 : i32
    %82 = tpu.dynamic_rotate %12 by %c255_i32 dim 1 : vector<8x256xf32>, i32 -> vector<8x256xf32>
    %c14_i32_40 = arith.constant 14 : i32
    %83 = vector.broadcast %c14_i32_40 : i32 to vector<8x256xi32>
    %84 = arith.cmpi sle, %29, %83 : vector<8x256xi32>
    %cst_41 = arith.constant 0.000000e+00 : f32
    %85 = vector.broadcast %cst_41 : f32 to vector<8x256xf32>
    %86 = arith.select %84, %82, %85 : vector<8x256xi1>, vector<8x256xf32>
    %c5 = arith.constant 5 : index
    %c0_42 = arith.constant 0 : index
    %c0_43 = arith.constant 0 : index
    %87 = vector.load %arg5[%c5, %c0_42, %c0_43] : memref<9x8x8xbf16, #tpu.memory_space<vmem>>, vector<1x8x8xbf16>
    %88 = vector.shape_cast %87 : vector<1x8x8xbf16> to vector<8x8xbf16>
    %89 = arith.truncf %86 : vector<8x256xf32> to vector<8x256xbf16>
    %cst_44 = arith.constant dense<0.000000e+00> : vector<8x256xf32>
    %90 = tpu.matmul %88, %89, %cst_44 {dimension_numbers = #tpu.dot_dimension_numbers<[1], [0], [0], [1], [0, 0, 1, 1], [], []>} : vector<8x8xbf16>, vector<8x256xbf16>, vector<8x256xf32> -> vector<8x256xf32>
    %91 = arith.addf %81, %90 : vector<8x256xf32>
    %c241_i32 = arith.constant 241 : i32
    %92 = tpu.dynamic_rotate %12 by %c241_i32 dim 1 : vector<8x256xf32>, i32 -> vector<8x256xf32>
    %c240_i32 = arith.constant 240 : i32
    %93 = vector.broadcast %c240_i32 : i32 to vector<8x256xi32>
    %94 = arith.cmpi slt, %13, %93 : vector<8x256xi32>
    %c1_i32_45 = arith.constant 1 : i32
    %95 = vector.broadcast %c1_i32_45 : i32 to vector<8x256xi32>
    %96 = arith.cmpi sge, %29, %95 : vector<8x256xi32>
    %97 = arith.andi %94, %96 : vector<8x256xi1>
    %cst_46 = arith.constant 0.000000e+00 : f32
    %98 = vector.broadcast %cst_46 : f32 to vector<8x256xf32>
    %99 = arith.select %97, %92, %98 : vector<8x256xi1>, vector<8x256xf32>
    %c6 = arith.constant 6 : index
    %c0_47 = arith.constant 0 : index
    %c0_48 = arith.constant 0 : index
    %100 = vector.load %arg5[%c6, %c0_47, %c0_48] : memref<9x8x8xbf16, #tpu.memory_space<vmem>>, vector<1x8x8xbf16>
    %101 = vector.shape_cast %100 : vector<1x8x8xbf16> to vector<8x8xbf16>
    %102 = arith.truncf %99 : vector<8x256xf32> to vector<8x256xbf16>
    %cst_49 = arith.constant dense<0.000000e+00> : vector<8x256xf32>
    %103 = tpu.matmul %101, %102, %cst_49 {dimension_numbers = #tpu.dot_dimension_numbers<[1], [0], [0], [1], [0, 0, 1, 1], [], []>} : vector<8x8xbf16>, vector<8x256xbf16>, vector<8x256xf32> -> vector<8x256xf32>
    %104 = arith.addf %91, %103 : vector<8x256xf32>
    %c240_i32_50 = arith.constant 240 : i32
    %105 = tpu.dynamic_rotate %12 by %c240_i32_50 dim 1 : vector<8x256xf32>, i32 -> vector<8x256xf32>
    %c240_i32_51 = arith.constant 240 : i32
    %106 = vector.broadcast %c240_i32_51 : i32 to vector<8x256xi32>
    %107 = arith.cmpi slt, %13, %106 : vector<8x256xi32>
    %cst_52 = arith.constant 0.000000e+00 : f32
    %108 = vector.broadcast %cst_52 : f32 to vector<8x256xf32>
    %109 = arith.select %107, %105, %108 : vector<8x256xi1>, vector<8x256xf32>
    %c7 = arith.constant 7 : index
    %c0_53 = arith.constant 0 : index
    %c0_54 = arith.constant 0 : index
    %110 = vector.load %arg5[%c7, %c0_53, %c0_54] : memref<9x8x8xbf16, #tpu.memory_space<vmem>>, vector<1x8x8xbf16>
    %111 = vector.shape_cast %110 : vector<1x8x8xbf16> to vector<8x8xbf16>
    %112 = arith.truncf %109 : vector<8x256xf32> to vector<8x256xbf16>
    %cst_55 = arith.constant dense<0.000000e+00> : vector<8x256xf32>
    %113 = tpu.matmul %111, %112, %cst_55 {dimension_numbers = #tpu.dot_dimension_numbers<[1], [0], [0], [1], [0, 0, 1, 1], [], []>} : vector<8x8xbf16>, vector<8x256xbf16>, vector<8x256xf32> -> vector<8x256xf32>
    %114 = arith.addf %104, %113 : vector<8x256xf32>
    %c239_i32 = arith.constant 239 : i32
    %115 = tpu.dynamic_rotate %12 by %c239_i32 dim 1 : vector<8x256xf32>, i32 -> vector<8x256xf32>
    %c240_i32_56 = arith.constant 240 : i32
    %116 = vector.broadcast %c240_i32_56 : i32 to vector<8x256xi32>
    %117 = arith.cmpi slt, %13, %116 : vector<8x256xi32>
    %c14_i32_57 = arith.constant 14 : i32
    %118 = vector.broadcast %c14_i32_57 : i32 to vector<8x256xi32>
    %119 = arith.cmpi sle, %29, %118 : vector<8x256xi32>
    %120 = arith.andi %117, %119 : vector<8x256xi1>
    %cst_58 = arith.constant 0.000000e+00 : f32
    %121 = vector.broadcast %cst_58 : f32 to vector<8x256xf32>
    %122 = arith.select %120, %115, %121 : vector<8x256xi1>, vector<8x256xf32>
    %c8 = arith.constant 8 : index
    %c0_59 = arith.constant 0 : index
    %c0_60 = arith.constant 0 : index
    %123 = vector.load %arg5[%c8, %c0_59, %c0_60] : memref<9x8x8xbf16, #tpu.memory_space<vmem>>, vector<1x8x8xbf16>
    %124 = vector.shape_cast %123 : vector<1x8x8xbf16> to vector<8x8xbf16>
    %125 = arith.truncf %122 : vector<8x256xf32> to vector<8x256xbf16>
    %cst_61 = arith.constant dense<0.000000e+00> : vector<8x256xf32>
    %126 = tpu.matmul %124, %125, %cst_61 {dimension_numbers = #tpu.dot_dimension_numbers<[1], [0], [0], [1], [0, 0, 1, 1], [], []>} : vector<8x8xbf16>, vector<8x256xbf16>, vector<8x256xf32> -> vector<8x256xf32>
    %127 = arith.addf %114, %126 : vector<8x256xf32>
    %128 = arith.truncf %127 : vector<8x256xf32> to vector<8x256xbf16>
    %c0_62 = arith.constant 0 : index
    %c0_63 = arith.constant 0 : index
    %c0_64 = arith.constant 0 : index
    %129 = vector.load %arg6[%c0_62, %c0_63, %c0_64] : memref<1x8x256xbf16, #tpu.memory_space<vmem>>, vector<1x8x256xbf16>
    %130 = vector.shape_cast %129 : vector<1x8x256xbf16> to vector<8x256xbf16>
    %131 = vector.shape_cast %128 : vector<8x256xbf16> to vector<1x8x256xbf16>
    tpu.vector_store %arg6[%c0_62, %c0_63, %c0_64], %131 {strides = array<i32>} : memref<1x8x256xbf16, #tpu.memory_space<vmem>>, vector<1x8x256xbf16>,
    %cst_65 = arith.constant dense<0.000000e+00> : vector<8xf32>
    %132 = vector.multi_reduction <add>, %127, %cst_65 [1] : vector<8x256xf32> to vector<8xf32>
    %133 = vector.shape_cast %132 : vector<8xf32> to vector<8x1xf32>
    %134 = arith.mulf %127, %127 : vector<8x256xf32>
    %cst_66 = arith.constant dense<0.000000e+00> : vector<8xf32>
    %135 = vector.multi_reduction <add>, %134, %cst_66 [1] : vector<8x256xf32> to vector<8xf32>
    %136 = vector.shape_cast %135 : vector<8xf32> to vector<8x1xf32>
    %137 = tpu.concatenate %133, %136 in 1 : vector<8x1xf32>, vector<8x1xf32> -> vector<8x2xf32>
    %c0_67 = arith.constant 0 : index
    %c0_68 = arith.constant 0 : index
    %c0_69 = arith.constant 0 : index
    %138 = vector.load %arg7[%c0_67, %c0_68, %c0_69] : memref<1x8x2xf32, #tpu.memory_space<vmem>>, vector<1x8x2xf32>
    %139 = vector.shape_cast %138 : vector<1x8x2xf32> to vector<8x2xf32>
    %140 = vector.shape_cast %137 : vector<8x2xf32> to vector<1x8x2xf32>
    tpu.vector_store %arg7[%c0_67, %c0_68, %c0_69], %140 {strides = array<i32>} : memref<1x8x2xf32, #tpu.memory_space<vmem>>, vector<1x8x2xf32>,
    return
  }
  func.func @transform_0(%arg0: i32) -> (i32, i32, i32) {
    %c0_i32 = arith.constant 0 : i32
    %c0_i32_0 = arith.constant 0 : i32
    %c0_i32_1 = arith.constant 0 : i32
    return %arg0, %c0_i32, %c0_i32_0 : i32, i32, i32
  }
  func.func @transform_1(%arg0: i32) -> (i32, i32) {
    %c0_i32 = arith.constant 0 : i32
    %c0_i32_0 = arith.constant 0 : i32
    %c0_i32_1 = arith.constant 0 : i32
    return %c0_i32, %c0_i32_0 : i32, i32
  }
  func.func @transform_2(%arg0: i32) -> (i32, i32) {
    %c0_i32 = arith.constant 0 : i32
    %c0_i32_0 = arith.constant 0 : i32
    %c0_i32_1 = arith.constant 0 : i32
    return %c0_i32, %c0_i32_0 : i32, i32
  }
  func.func @transform_3(%arg0: i32) -> (i32, i32) {
    %c0_i32 = arith.constant 0 : i32
    %c0_i32_0 = arith.constant 0 : i32
    %c0_i32_1 = arith.constant 0 : i32
    return %c0_i32, %c0_i32_0 : i32, i32
  }
  func.func @transform_4(%arg0: i32) -> (i32, i32, i32) {
    %c0_i32 = arith.constant 0 : i32
    %c0_i32_0 = arith.constant 0 : i32
    %c0_i32_1 = arith.constant 0 : i32
    %c0_i32_2 = arith.constant 0 : i32
    return %c0_i32, %c0_i32_0, %c0_i32_1 : i32, i32, i32
  }
  func.func @transform_5(%arg0: i32) -> (i32, i32, i32) {
    %c0_i32 = arith.constant 0 : i32
    %c0_i32_0 = arith.constant 0 : i32
    %c0_i32_1 = arith.constant 0 : i32
    return %arg0, %c0_i32, %c0_i32_0 : i32, i32, i32
  }
  func.func @transform_6(%arg0: i32) -> (i32, i32, i32) {
    %c0_i32 = arith.constant 0 : i32
    %c0_i32_0 = arith.constant 0 : i32
    %c0_i32_1 = arith.constant 0 : i32
    return %arg0, %c0_i32, %c0_i32_0 : i32, i32, i32
  }
}

module attributes {stable_mosaic.version = 11 : i64} {
  func.func @bn_relu_kernel(%arg0: i32, %arg1: i32, %arg2: memref<1x8x256xbf16, #tpu.memory_space<vmem>>, %arg3: memref<8x1xf32, #tpu.memory_space<vmem>>, %arg4: memref<8x1xf32, #tpu.memory_space<vmem>>, %arg5: memref<1x8x256xf32, #tpu.memory_space<vmem>>) attributes {dimension_semantics = [#tpu.dimension_semantics<parallel>, #tpu.dimension_semantics<parallel>], iteration_bounds = array<i64: 2, 1>, scalar_prefetch = 0 : i64, scratch_operands = 0 : i64, tpu.core_type = #tpu.core_type<tc>, window_params = [{transform_indices = @transform_0, window_bounds = array<i64: 1, 8, 256>}, {pipeline_mode = #tpu.pipeline_mode<synchronous>, transform_indices = @transform_1, window_bounds = array<i64: 8, 1>}, {pipeline_mode = #tpu.pipeline_mode<synchronous>, transform_indices = @transform_2, window_bounds = array<i64: 8, 1>}, {transform_indices = @transform_3, window_bounds = array<i64: 1, 8, 256>}]} {
    %c0 = arith.constant 0 : index
    %c0_0 = arith.constant 0 : index
    %c0_1 = arith.constant 0 : index
    %0 = vector.load %arg2[%c0, %c0_0, %c0_1] : memref<1x8x256xbf16, #tpu.memory_space<vmem>>, vector<1x8x256xbf16>
    %1 = vector.shape_cast %0 : vector<1x8x256xbf16> to vector<8x256xbf16>
    %2 = arith.extf %1 : vector<8x256xbf16> to vector<8x256xf32>
    %c0_2 = arith.constant 0 : index
    %c0_3 = arith.constant 0 : index
    %3 = vector.load %arg3[%c0_2, %c0_3] : memref<8x1xf32, #tpu.memory_space<vmem>>, vector<8x1xf32>
    %4 = vector.broadcast %3 : vector<8x1xf32> to vector<8x256xf32>
    %5 = arith.mulf %2, %4 : vector<8x256xf32>
    %c0_4 = arith.constant 0 : index
    %c0_5 = arith.constant 0 : index
    %6 = vector.load %arg4[%c0_4, %c0_5] : memref<8x1xf32, #tpu.memory_space<vmem>>, vector<8x1xf32>
    %7 = vector.broadcast %6 : vector<8x1xf32> to vector<8x256xf32>
    %8 = arith.addf %5, %7 : vector<8x256xf32>
    %cst = arith.constant 0.000000e+00 : f32
    %9 = vector.broadcast %cst : f32 to vector<8x256xf32>
    %10 = arith.maximumf %8, %9 : vector<8x256xf32>
    %c0_6 = arith.constant 0 : index
    %c0_7 = arith.constant 0 : index
    %c0_8 = arith.constant 0 : index
    %11 = vector.load %arg5[%c0_6, %c0_7, %c0_8] : memref<1x8x256xf32, #tpu.memory_space<vmem>>, vector<1x8x256xf32>
    %12 = vector.shape_cast %11 : vector<1x8x256xf32> to vector<8x256xf32>
    %13 = vector.shape_cast %10 : vector<8x256xf32> to vector<1x8x256xf32>
    tpu.vector_store %arg5[%c0_6, %c0_7, %c0_8], %13 {strides = array<i32>} : memref<1x8x256xf32, #tpu.memory_space<vmem>>, vector<1x8x256xf32>,
    return
  }
  func.func @transform_0(%arg0: i32, %arg1: i32) -> (i32, i32, i32) {
    %c0_i32 = arith.constant 0 : i32
    %c0_i32_0 = arith.constant 0 : i32
    return %arg0, %c0_i32, %arg1 : i32, i32, i32
  }
  func.func @transform_1(%arg0: i32, %arg1: i32) -> (i32, i32) {
    %c0_i32 = arith.constant 0 : i32
    %c0_i32_0 = arith.constant 0 : i32
    %c0_i32_1 = arith.constant 0 : i32
    return %c0_i32, %c0_i32_0 : i32, i32
  }
  func.func @transform_2(%arg0: i32, %arg1: i32) -> (i32, i32) {
    %c0_i32 = arith.constant 0 : i32
    %c0_i32_0 = arith.constant 0 : i32
    %c0_i32_1 = arith.constant 0 : i32
    return %c0_i32, %c0_i32_0 : i32, i32
  }
  func.func @transform_3(%arg0: i32, %arg1: i32) -> (i32, i32, i32) {
    %c0_i32 = arith.constant 0 : i32
    %c0_i32_0 = arith.constant 0 : i32
    return %arg0, %c0_i32, %arg1 : i32, i32, i32
  }
}

</mosaic_0001>

<bundles_post_ra>
// kernel: double_conv.3
= control target key start
LH: loop header
LB: loop body
LE: loop exit
PB: predicated region body
PF: predicated region fallthrough
CT: control target
= control target key end

     0   :  { %s396_s9 = smov 0   ;;  %s398_s10 = smov 0   ;;  %s436_s0 = inlined_call_operand.vmem [shape: f32[2,12,256], index: 0, kind: input, shape index: {}]   ;;  %s437_s1 = inlined_call_operand.vmem [shape: bf16[8,12], index: 1, kind: input, shape index: {}]   ;;  %s438_s2 = inlined_call_operand.vmem [shape: f32[2,8,2], index: 2, kind: output, shape index: {}]  }
   0x1   :  { %s400_s11 = smov 0  }
   0x2 LB: > { %s24_s12 = sadd.s32 1, %s374_s10  ;;  %p322_p0 = scmp.ge.s32.totalorder %s378_s11, 1  ;;  %s378_s11 = sphi %s400_s11, %s12_s11   ;;  %s374_s10 = sphi %s398_s10, %s440_s10   ;;  %s370_s9 = sphi %s396_s9, %s439_s9  }
   0x3   : > { %p26_p1 = scmp.ge.s32.totalorder %s24_s12, 2  ;;  %p133_p2 = scmp.lt.s32.totalorder %s378_s11, 3 }
   0x5   : > { %s442_s12 = smov (%p26_p1, %s24_s12), 0  ;;  %p134_p3 = pnand %p322_p0, %p133_p2 }
   0x6   : > { %p160_p4 = scmp.lt.s32.totalorder (!%p134_p3), %s370_s9, 1  ;;  %v380_v0 = vmov (!%p134_p3), 0   ;;  %vm187_vm0 = vcmask (!%p134_p3), 1045504   ;;  %v182_v8 = vld [vmem:[%s437_s1] sm:$0xf] (!%p134_p3)  ;;  %vm183_vm1 = vcmask (!%p134_p3), 97280  }
   0x7   : > { %137 = sbr.rel (%p134_p3) target bundleno = 388 (0x184), region = 28  ;;  %226 = vmatprep.mubr.bf16.mxu0 (!%p134_p3), %v380_v0  ;;  %vm243_vm2 = vcmask (!%p134_p3), 7168   ;;  %vm245_vm3 = vcmask (!%p134_p3), 15360  }
   0xe   : > { %s444_s9 = smov (!%p160_p4, %s370_s9), 1 }
   0xf   : > { %s330_s13 = sshll.u32 %s444_s9, 5  ;;  %s325_s19 = sshll.u32 %s444_s9, 3 }
  0x10   : > { %s167_s16 = scalar_lea.vmem %s436_s0, %s330_s13  ;;  %s173_s22 = scalar_lea.vmem %s438_s2, %s325_s19 }
  0x11   : > { %v177_v1 = vld [vmem:[%s167_s16 + $0x8] sm:$0xff]  ;;  %v179_v2 = vld [vmem:[%s167_s16 + $0x18] sm:$0xf]  ;;  %v176_v3 = vld [vmem:[%s167_s16] sm:$0xff] }
  0x12   : > { %v181_v4 = vpack.c.bf16 %v179_v2, %v177_v1  ;;  %v178_v5 = vld [vmem:[%s167_s16 + $0x10] sm:$0xf] }
  0x13   : > { %v180_v6 = vpack.c.bf16 %v178_v5, %v176_v3 }
  0x14   : > { %326 = vmatprep.subr.msk.bf16.mxu0 %vm187_vm0, %v181_v4 }
  0x15   : > { %v189_v7 = vsel %vm187_vm0, %v180_v6, 0 }
  0x16   : > { %195 = vmatpush1.bf16.msra.mxu0 %v189_v7 }
  0x19   : > { %327 = vmatmul.mubr.msk.bf16.vlgmr.msra.gmra.mrb[0].mxu0 %vm183_vm1, %v182_v8 }
  0xec   : > { %v228_v9 = vpop.f32.mrb[0].mxu0 }
  0xed   : > { %v238_v10 = vmul.f32 %v228_v9, %v228_v9  ;;  %v230_v11 = vpop.f32.mrb[1].mxu0 }
  0xee   : > { %v239_v12 = vmul.f32 %v230_v11, %v230_v11  ;;  %v232_v13 = vpop.f32.mrb[2].mxu0  ;;  %v235_v14 = vadd.f32 %v230_v11, %v228_v9 }
  0xef   : > { %v233_v15 = vpop.f32.mrb[3].mxu0 }
  0xf0   : > { %236 = vadd.xlane.f32.xlu0 %v235_v14  ;;  %v240_v16 = vadd.f32 %v239_v12, %v238_v10 }
  0xf4   : > { %241 = vadd.xlane.f32.xlu0 %v240_v16 }
 0x17d   : > { %v237_v17 = vpop.xlane.xlu0 %236 }
 0x181   : > { %v242_v18 = vpop.xlane.xlu0 %241 }
 0x182   : > { %v244_v19 = vsel %vm243_vm2, %v237_v17, %v242_v18 }
 0x183   : > { %246 = vst.msk [vmem:[%s173_s22] sm:$0xff] %vm245_vm3, %v244_v19 }
 0x184 PF: > { %s12_s11 = sadd.s32 1, %s378_s11   ;;  %s439_s9 = smov %s374_s10 }
 0x185   : > { %p9_p5 = scmp.ge.s32.totalorder %s12_s11, 4   ;;  %s440_s10 = smov %s442_s12 }
 0x187   :  { %11 = sbr.rel (!%p9_p5) target bundleno = 2 (0x2), region = 58 }

// kernel: double_conv.5
= control target key start
LH: loop header
LB: loop body
LE: loop exit
PB: predicated region body
PF: predicated region fallthrough
CT: control target
= control target key end

     0   :  { %s404_s12 = smov 0   ;;  %s406_s13 = smov 0   ;;  %s443_s0 = inlined_call_operand.vmem [shape: bf16[2,8,256], index: 0, kind: input, shape index: {}]   ;;  %s444_s1 = inlined_call_operand.vmem [shape: f32[8,1], index: 1, kind: input, shape index: {}]   ;;  %s445_s2 = inlined_call_operand.vmem [shape: f32[8,1], index: 2, kind: input, shape index: {}]   ;;  %s446_s3 = inlined_call_operand.vmem [shape: f32[2,8,256], index: 3, kind: output, shape index: {}]  }
   0x1   :  { %s408_s14 = smov 0  }
   0x2 LB: > { %s25_s15 = sadd.s32 1, %s377_s13  ;;  %p324_p0 = scmp.ge.s32.totalorder %s381_s14, 1  ;;  %s381_s14 = sphi %s408_s14, %s13_s14   ;;  %s377_s13 = sphi %s406_s13, %s448_s13   ;;  %s373_s12 = sphi %s404_s12, %s447_s12  }
   0x3   : > { %p27_p1 = scmp.ge.s32.totalorder %s25_s15, 2  ;;  %p158_p2 = scmp.lt.s32.totalorder %s381_s14, 3 }
   0x5   : > { %s450_s15 = smov (%p27_p1, %s25_s15), 0  ;;  %p159_p3 = pnand %p324_p0, %p158_p2 }
   0x6   : > { %v213_v0 = vld [vmem:[%s444_s1] sm:$0xff] (!%p159_p3)  ;;  %v383_v1 = vmov (!%p159_p3), 0   ;;  %p191_p4 = scmp.lt.s32.totalorder (!%p159_p3), %s373_s12, 1 }
   0x7   : > { %162 = sbr.rel (%p159_p3) target bundleno = 145 (0x91), region = 32  ;;  %358 = vset.pattern.permute.xlu0 (!%p159_p3), %v383_v1  ;;  %v221_v2 = vld [vmem:[%s445_s2] sm:$0xff] (!%p159_p3) }
   0x8   : > { %216 = vperm.xlu0 (!%p159_p3), %358, %v213_v0  }
   0xc   : > { %224 = vperm.xlu0 (!%p159_p3), %358, %v221_v2  }
   0xe   : > { %s452_s12 = smov (!%p191_p4, %s373_s12), 1 }
   0xf   : > { %s331_s20 = sshll.u32 %s452_s12, 3  ;;  %s332_s24 = sshll.u32 %s452_s12, 4 }
  0x10   : > { %s198_s23 = scalar_lea.vmem %s443_s0, %s331_s20  ;;  %s208_s27 = scalar_lea.vmem %s446_s3, %s332_s24 }
  0x11   : > { %v210_v3 = vld [vmem:[%s198_s23] sm:$0xff] }
  0x12   : > { %v211_v4 = vunpack.c.l.bf16 %v210_v3  ;;  %v212_v5 = vunpack.c.h.bf16 %v210_v3 }
  0x87   : > { %v217_v6 = vpop.permute.xlu0 %216 }
  0x88   : > { %v219_v7 = vmul.f32 %v217_v6, %v211_v4  ;;  %v220_v8 = vmul.f32 %v217_v6, %v212_v5 }
  0x8b   : > { %v225_v9 = vpop.permute.xlu0 %224 }
  0x8c   : > { %v227_v10 = vadd.f32 %v225_v9, %v219_v7  ;;  %v228_v11 = vadd.f32 %v225_v9, %v220_v8 }
  0x8e   : > { %v229_v12 = vmax.f32 %v227_v10, 0.0  ;;  %v230_v13 = vmax.f32 %v228_v11, 0.0 }
  0x90   : > { %231 = vst [vmem:[%s208_s27] sm:$0xff] %v229_v12  ;;  %232 = vst [vmem:[%s208_s27 + $0x8] sm:$0xff] %v230_v13 }
  0x91 PF: > { %s13_s14 = sadd.s32 1, %s381_s14   ;;  %s447_s12 = smov %s377_s13 }
  0x92   : > { %p10_p5 = scmp.ge.s32.totalorder %s13_s14, 4   ;;  %s448_s13 = smov %s450_s15 }
  0x94   :  { %12 = sbr.rel (!%p10_p5) target bundleno = 2 (0x2), region = 62 }

// kernel: double_conv.4
= control target key start
LH: loop header
LB: loop body
LE: loop exit
PB: predicated region body
PF: predicated region fallthrough
CT: control target
= control target key end

     0   :  { %s1248_s21 = smov 0   ;;  %s1435_s0 = inlined_call_operand.vmem [shape: f32[2,12,256], index: 0, kind: input, shape index: {}]   ;;  %s1436_s1 = inlined_call_operand.vmem [shape: bf16[8,12], index: 1, kind: input, shape index: {}]   ;;  %s1437_s2 = inlined_call_operand.vmem [shape: f32[8,1], index: 2, kind: input, shape index: {}]   ;;  %s1438_s3 = inlined_call_operand.vmem [shape: f32[8,1], index: 3, kind: input, shape index: {}]   ;;  %s1439_s4 = inlined_call_operand.vmem [shape: bf16[9,8,8], index: 4, kind: input, shape index: {}]   ;;  %s1440_s5 = inlined_call_operand.vmem [shape: bf16[2,8,256], index: 5, kind: output, shape index: {0}]   ;;  %s1441_s6 = inlined_call_operand.vmem [shape: f32[2,8,2], index: 6, kind: output, shape index: {1}]  }
   0x1 LB: > { %s1064_s22 = sadd.s32 4294967295, %s1202_s21   ;;  %p1068_p0 = scmp.ge.s32.totalorder %s1202_s21, 1  ;;  %s1202_s21 = sphi %s1248_s21, %s17_s21  }
   0x2   : > { %p215_p1 = scmp.lt.s32.totalorder %s1202_s21, 3 }
   0x4   : > { %p216_p2 = pnand %p1068_p0, %p215_p1 }
   0x5   : > { %p249_p3 = scmp.lt.s32.totalorder (!%p216_p2), %s1064_s22, 1  ;;  %v1204_v0 = vmov (!%p216_p2), 0   ;;  %v323_v1 = vld [vmem:[%s1437_s2] sm:$0xff] (!%p216_p2)  ;;  %vm275_vm0 = vcmask (!%p216_p2), 1045504   ;;  %vm271_vm1 = vcmask (!%p216_p2), 97280   ;;  %vm403_vm2 = vcmask (!%p216_p2), 1043456  }
   0x6   : > { %219 = sbr.rel (%p216_p2) target bundleno = 775 (0x307), region = 40  ;;  %314 = vmatprep.mubr.bf16.mxu0 (!%p216_p2), %v1204_v0  ;;  %1155 = vset.pattern.permute.xlu0 (!%p216_p2), %v1204_v0  ;;  %v331_v2 = vld [vmem:[%s1438_s3] sm:$0xff] (!%p216_p2)  ;;  %s1205_s9 = smov (!%p216_p2), 17   ;;  %vm399_vm3 = vcmask (!%p216_p2), 64512   ;;  %v1087_v27 = vld [vmem:[%s1439_s4 + $0x10] sm:$0xf] (!%p216_p2)  ;;  %v341_v28 = vlaneseq (!%p216_p2) }
   0x7   : > { %326 = vperm.xlu0 (!%p216_p2), %1155, %v323_v1   ;;  %680 = vmatprep.mubr.bf16.mxu1 (!%p216_p2), %v1204_v0  ;;  %v270_v10 = vld [vmem:[%s1436_s1] sm:$0xf] (!%p216_p2)  ;;  %s1206_s10 = smov (!%p216_p2), 16   ;;  %s1207_s13 = smov (!%p216_p2), 15   ;;  %v1084_v57 = vld [vmem:[%s1439_s4 + $0xc] sm:$0xf] (!%p216_p2) }
   0x8   : > { %s1208_s14 = smov (!%p216_p2), 127   ;;  %s1209_s15 = smov (!%p216_p2), 1   ;;  %v1282_v29 = vand.u32 (!%p216_p2), 127, %v341_v28 }
   0x9   : > { %s1210_s16 = smov (!%p216_p2), 113   ;;  %s1211_s17 = smov (!%p216_p2), 112  }
   0xa   : > { %s1212_s18 = smov (!%p216_p2), 111   ;;  %v1285_v30 = vadd.s32 (!%p216_p2), 128, %v1282_v29  ;;  %v348_v31 = vand.u32 (!%p216_p2), 15, %v1282_v29  ;;  %vm375_vm4 = vcmp.ge.s32.totalorder (!%p216_p2), %v1282_v29, 16  ;;  %vm372_vm6 = vcmp.lt.s32.totalorder (!%p216_p2), %v1282_v29, 17 }
   0xb   : > { %334 = vperm.xlu0 (!%p216_p2), %1155, %v331_v2   ;;  %vm390_vm8 = vcmp.lt.s32.totalorder (!%p216_p2), %v1282_v29, 16  ;;  %vm505_vm10 = vcmp.lt.s32.totalorder (!%p216_p2), %v1282_v29, 15  ;;  %vm695_vm12 = vcmp.lt.s32.totalorder (!%p216_p2), %v1282_v29, 127  ;;  %vm760_vm15 = vcmp.lt.s32.totalorder (!%p216_p2), %v1282_v29, 113 }
   0xc   : > { %v355_v32 = vand.u32 (!%p216_p2), 15, %v1285_v30  ;;  %vm1290_vm5 = vcmp.ge.s32.totalorder (!%p216_p2), %v348_v31, 1  ;;  %vm764_vm13 = vcmp.lt.s32.totalorder (!%p216_p2), %v1285_v30, 240  ;;  %vm1316_vm14 = vcmp.le.s32.totalorder (!%p216_p2), %v348_v31, 14  ;;  %v1093_v30 = vld [vmem:[%s1439_s4 + $0x18] sm:$0xf] (!%p216_p2) }
   0xd   : > { %s1451_s22 = smov (!%p249_p3, %s1064_s22), 1  ;;  %vm379_vm9 = vmand %vm375_vm4, %vm1290_vm5 }
   0xe   : > { %s1105_s27 = sshll.u32 %s1451_s22, 5  ;;  %vm1295_vm7 = vcmp.ge.s32.totalorder %v355_v32, 1  ;;  %vm1305_vm11 = vcmp.le.s32.totalorder %v355_v32, 14 }
   0xf   : > { %s253_s30 = scalar_lea.vmem %s1435_s0, %s1105_s27 }
  0x10   : > { %v265_v3 = vld [vmem:[%s253_s30 + $0x8] sm:$0xff]  ;;  %v267_v4 = vld [vmem:[%s253_s30 + $0x18] sm:$0xf]  ;;  %v264_v5 = vld [vmem:[%s253_s30] sm:$0xff] }
  0x11   : > { %v269_v6 = vpack.c.bf16 %v267_v4, %v265_v3  ;;  %v266_v7 = vld [vmem:[%s253_s30 + $0x10] sm:$0xf] }
  0x12   : > { %v268_v8 = vpack.c.bf16 %v266_v7, %v264_v5 }
  0x13   : > { %1074 = vmatprep.subr.msk.bf16.mxu0 %vm275_vm0, %v269_v6  ;;  %v1076_v6 = vld [vmem:[%s1439_s4 + $0x4] sm:$0xf] }
  0x14   : > { %v277_v9 = vsel %vm275_vm0, %v268_v8, 0  ;;  %vm766_vm0 = vmand %vm764_vm13, %vm1295_vm7 }
  0x15   : > { %283 = vmatpush1.bf16.msra.mxu0 %v277_v9 }
  0x18   : > { %1075 = vmatmul.mubr.msk.bf16.vlgmr.msra.gmra.mrb[0].mxu0 %vm271_vm1, %v270_v10  ;;  %vm829_vm1 = vcmp.lt.s32.totalorder %v1282_v29, 112 }
  0x19   : > { %442 = vmatprep.mubr.bf16.mxu0 %v1204_v0 }
  0x86   : > { %v327_v11 = vpop.permute.xlu0 %326 }
  0x8a   : > { %v335_v15 = vpop.permute.xlu0 %334 }
  0xeb   : > { %v316_v12 = vpop.f32.mrb[0].mxu0 }
  0xec   : > { %v329_v13 = vmul.f32 %v327_v11, %v316_v12  ;;  %v318_v14 = vpop.f32.mrb[1].mxu0 }
  0xed   : > { %v330_v16 = vmul.f32 %v327_v11, %v318_v14  ;;  %v320_v17 = vpop.f32.mrb[2].mxu0 }
  0xee   : > { %v337_v18 = vadd.f32 %v335_v15, %v329_v13  ;;  %v321_v19 = vpop.f32.mrb[3].mxu0 }
  0xef   : > { %v338_v20 = vadd.f32 %v335_v15, %v330_v16 }
  0xf0   : > { %v339_v21 = vmax.f32 %v337_v18, 0.0 }
  0xf1   : > { %v340_v22 = vmax.f32 %v338_v20, 0.0 }
  0xf2   : > { %v637_v23 = vpack.c.bf16 %v339_v21, %v339_v21 }
  0xf3   : > { %v1166_v24 = vpack.i.bf16 %v340_v22, %v339_v21  ;;  %v638_v25 = vpack.c.bf16 %v340_v22, %v340_v22 }
  0xf4   : > { %v643_v26 = vsel %vm403_vm2, %v637_v23, 0 }
  0xf5   : > { %1167 = vrot.lane.b32.xlu0 %v1166_v24, %s1205_s9  ;;  %1157 = vrot.lane.b32.xlu1 %v1166_v24, %s1206_s10 }
  0xf6   : > { %1088 = vmatprep.subr.msk.bf16.mxu1 %vm403_vm2, %v638_v25 }
  0xf7   : > { %649 = vmatpush1.bf16.msra.mxu1 %v643_v26 }
  0xf9   : > { %1177 = vrot.lane.b32.xlu0 %v1166_v24, %s1207_s13  ;;  %1162 = vrot.lane.b32.xlu1 %v1166_v24, %s1208_s14  ;;  %s1106_s13 = sshll.u32 %s1451_s22, 3 }
  0xfa   : > { %1089 = vmatmul.mubr.msk.bf16.vlgmr.msra.gmra.mrb[0].mxu1 %vm399_vm3, %v1087_v27  ;;  %v1090_v27 = vld [vmem:[%s1439_s4 + $0x14] sm:$0xf] }
  0xfb   : > { %745 = vmatprep.mubr.bf16.mxu1 %v1204_v0 }
  0xfd   : > { %1187 = vrot.lane.b32.xlu0 %v1166_v24, %s1209_s15  ;;  %1172 = vrot.lane.b32.xlu1 %v1166_v24, %s1210_s16  ;;  %s258_s16 = scalar_lea.vmem %s1440_s5, %s1106_s13 }
 0x101   : > { %1182 = vrot.lane.b32.xlu1 %v1166_v24, %s1211_s17 }
 0x105   : > { %1192 = vrot.lane.b32.xlu1 %v1166_v24, %s1212_s18  ;;  %s262_s18 = scalar_lea.vmem %s1441_s6, %s1106_s13 }
 0x167   : > { %v1168_v35 = vpop.permute.xlu0 %1167  ;;  %v1158_v36 = vpop.permute.xlu1 %1157 }
 0x168   : > { %v1170_v37 = vunpack.i.h.bf16 %v1168_v35  ;;  %v1169_v38 = vunpack.i.l.bf16 %v1168_v35  ;;  %v1160_v39 = vunpack.i.h.bf16 %v1158_v36  ;;  %v1159_v40 = vunpack.i.l.bf16 %v1158_v36 }
 0x16a   : > { %v373_v42 = vsel %vm372_vm6, %v1169_v38, %v1170_v37  ;;  %v374_v43 = vsel %vm372_vm6, %v1170_v37, %v1169_v38  ;;  %v391_v44 = vsel %vm390_vm8, %v1159_v40, %v1160_v39  ;;  %v392_v45 = vsel %vm390_vm8, %v1160_v39, %v1159_v40  ;;  %vm510_vm6 = vmand %vm375_vm4, %vm1316_vm14 }
 0x16b   : > { %v382_v46 = vsel %vm1295_vm7, %v373_v42, 0.0  ;;  %v398_v47 = vpack.c.bf16 %v391_v44, %v391_v44  ;;  %v1178_v48 = vpop.permute.xlu0 %1177  ;;  %v1163_v49 = vpop.permute.xlu1 %1162  ;;  %v393_v50 = vsel %vm375_vm4, %v392_v45, 0.0  ;;  %v381_v51 = vsel %vm379_vm9, %v374_v43, 0.0  ;;  %v383_v43 = vld [vmem:[%s1439_s4] sm:$0xf]  ;;  %vm898_vm9 = vmand %vm764_vm13, %vm1305_vm11 }
 0x16c   : > { %v1180_v52 = vunpack.i.h.bf16 %v1178_v48  ;;  %v1179_v53 = vunpack.i.l.bf16 %v1178_v48  ;;  %v1165_v54 = vunpack.i.h.bf16 %v1163_v49  ;;  %v1164_v55 = vunpack.i.l.bf16 %v1163_v49 }
 0x16d   : > { %1077 = vmatprep.subr.msk.bf16.mxu0 %vm403_vm2, %v398_v47  ;;  %v397_v56 = vpack.c.bf16 %v393_v50, %v393_v50  ;;  %v384_v61 = vpack.c.bf16 %v381_v51, %v381_v51  ;;  %v385_v2 = vpack.c.bf16 %v382_v46, %v382_v46  ;;  %vm574_vm8 = vcmp.lt.s32.totalorder %v1282_v29, 1 }
 0x16e   : > { %v506_v58 = vsel %vm505_vm10, %v1179_v53, %v1180_v52  ;;  %v696_v59 = vsel %vm695_vm12, %v1164_v55, %v1165_v54  ;;  %v697_v60 = vsel %vm695_vm12, %v1165_v54, %v1164_v55  ;;  %v507_v22 = vsel %vm505_vm10, %v1180_v52, %v1179_v53  ;;  %v1081_v54 = vld [vmem:[%s1439_s4 + $0x8] sm:$0xf] }
 0x16f   : > { %v699_v62 = vsel %vm1305_vm11, %v697_v60, 0.0  ;;  %v1173_v63 = vpop.permute.xlu1 %1172  ;;  %v405_v1 = vsel %vm403_vm2, %v397_v56, 0  ;;  %v513_v3 = vsel %vm1305_vm11, %v506_v58, 0.0  ;;  %v698_v8 = vsel %vm1316_vm14, %v696_v59, 0.0  ;;  %v1188_v9 = vpop.permute.xlu0 %1187  ;;  %v1096_v56 = vld [vmem:[%s1439_s4 + $0x1c] sm:$0xf] }
 0x170   : > { %v1175_v4 = vunpack.i.h.bf16 %v1173_v63  ;;  %v1174_v5 = vunpack.i.l.bf16 %v1173_v63  ;;  %411 = vmatpush1.bf16.msra.mxu0 %v405_v1  ;;  %v703_v7 = vpack.c.bf16 %v699_v62, %v699_v62  ;;  %v455_v12 = vsel %vm403_vm2, %v384_v61, 0  ;;  %v1099_v59 = vld [vmem:[%s1439_s4 + $0x20] sm:$0xf] }
 0x171   : > { %1079 = vmatprep.subr.msk.bf16.mxu0 %vm403_vm2, %v385_v2  ;;  %v702_v15 = vpack.c.bf16 %v698_v8, %v698_v8  ;;  %v517_v16 = vpack.c.bf16 %v513_v3, %v513_v3  ;;  %v1190_v23 = vunpack.i.h.bf16 %v1188_v9  ;;  %v1189_v24 = vunpack.i.l.bf16 %v1188_v9 }
 0x172   : > { %v761_v10 = vsel %vm760_vm15, %v1174_v5, %v1175_v4  ;;  %v762_v11 = vsel %vm760_vm15, %v1175_v4, %v1174_v5  ;;  %1091 = vmatprep.subr.msk.bf16.mxu1 %vm403_vm2, %v703_v7  ;;  %v512_v36 = vsel %vm510_vm6, %v507_v22, 0.0  ;;  %vm894_vm4 = vcmp.lt.s32.totalorder %v1282_v29, 111 }
 0x173   : > { %v768_v13 = vsel %vm766_vm0, %v762_v11, 0.0  ;;  %1078 = vmatmul.mubr.msk.bf16.vlgmr.msra.gmra.mrb[4].mxu0 %vm399_vm3, %v1076_v6  ;;  %v1183_v14 = vpop.permute.xlu1 %1182  ;;  %v767_v17 = vsel %vm1290_vm5, %v761_v10, 0.0  ;;  %v708_v25 = vsel %vm403_vm2, %v702_v15, 0  ;;  %v575_v37 = vsel %vm574_vm8, %v1189_v24, %v1190_v23 }
 0x174   : > { %v1185_v18 = vunpack.i.h.bf16 %v1183_v14  ;;  %v1184_v19 = vunpack.i.l.bf16 %v1183_v14  ;;  %461 = vmatpush1.bf16.msra.mxu0 %v455_v12  ;;  %v772_v20 = vpack.c.bf16 %v768_v13, %v768_v13  ;;  %v771_v21 = vpack.c.bf16 %v767_v17, %v767_v17  ;;  %492 = vmatprep.mubr.bf16.mxu0 %v1204_v0 }
 0x175   : > { %1082 = vmatprep.subr.msk.bf16.mxu0 %vm403_vm2, %v517_v16  ;;  %714 = vmatpush1.bf16.msra.mxu1 %v708_v25  ;;  %v516_v40 = vpack.c.bf16 %v512_v36, %v512_v36  ;;  %v578_v42 = vsel %vm1295_vm7, %v575_v37, 0.0  ;;  %v576_v47 = vsel %vm574_vm8, %v1190_v23, %v1189_v24 }
 0x176   : > { %v831_v26 = vsel %vm829_vm1, %v1185_v18, %v1184_v19  ;;  %1094 = vmatprep.subr.msk.bf16.mxu1 %vm403_vm2, %v772_v20  ;;  %v777_v31 = vsel %vm403_vm2, %v771_v21, 0  ;;  %v830_v44 = vsel %vm829_vm1, %v1184_v19, %v1185_v18  ;;  %v582_v46 = vpack.c.bf16 %v578_v42, %v578_v42 }
 0x177   : > { %v833_v28 = vsel %vm764_vm13, %v831_v26, 0.0  ;;  %v1193_v32 = vpop.permute.xlu1 %1192  ;;  %v522_v34 = vsel %vm403_vm2, %v516_v40, 0  ;;  %v836_v41 = vpack.c.bf16 %v830_v44, %v830_v44  ;;  %v577_v49 = vsel %vm1290_vm5, %v576_v47, 0.0 }
 0x178   : > { %v837_v35 = vpack.c.bf16 %v833_v28, %v833_v28  ;;  %1092 = vmatmul.mubr.msk.bf16.vlgmr.msra.gmra.mrb[0].mxu1 %vm399_vm3, %v1090_v27  ;;  %v1195_v38 = vunpack.i.h.bf16 %v1193_v32  ;;  %v1194_v39 = vunpack.i.l.bf16 %v1193_v32  ;;  %v581_v53 = vpack.c.bf16 %v577_v49, %v577_v49 }
 0x179   : > { %783 = vmatpush1.bf16.msra.mxu1 %v777_v31  ;;  %814 = vmatprep.mubr.bf16.mxu1 %v1204_v0  ;;  %v842_v50 = vsel %vm403_vm2, %v836_v41, 0 }
 0x17a   : > { %1097 = vmatprep.subr.msk.bf16.mxu1 %vm403_vm2, %v837_v35  ;;  %v896_v45 = vsel %vm894_vm4, %v1195_v38, %v1194_v39  ;;  %v895_v52 = vsel %vm894_vm4, %v1194_v39, %v1195_v38  ;;  %v587_v55 = vsel %vm403_vm2, %v581_v53, 0 }
 0x17b   : > { %v900_v48 = vsel %vm898_vm9, %v896_v45, 0.0  ;;  %v899_v33 = vsel %vm1316_vm14, %v895_v52, 0.0 }
 0x17c   : > { %v904_v51 = vpack.c.bf16 %v900_v48, %v900_v48  ;;  %v903_v29 = vpack.c.bf16 %v899_v33, %v899_v33 }
 0x17e   : > { %v909_v58 = vsel %vm403_vm2, %v903_v29, 0 }
 0x17f   : > { %1080 = vmatmul.mubr.msk.bf16.vlgmr.msra.gmra.mrb[4].mxu0 %vm399_vm3, %v383_v43 }
 0x180   : > { %528 = vmatpush1.bf16.msra.mxu0 %v522_v34  ;;  %559 = vmatprep.mubr.bf16.mxu0 %v1204_v0 }
 0x181   : > { %1085 = vmatprep.subr.msk.bf16.mxu0 %vm403_vm2, %v582_v46 }
 0x184   : > { %1095 = vmatmul.mubr.msk.bf16.vlgmr.msra.gmra.mrb[0].mxu1 %vm399_vm3, %v1093_v30 }
 0x185   : > { %848 = vmatpush1.bf16.msra.mxu1 %v842_v50  ;;  %879 = vmatprep.mubr.bf16.mxu1 %v1204_v0 }
 0x186   : > { %1100 = vmatprep.subr.msk.bf16.mxu1 %vm403_vm2, %v904_v51  ;;  %vm974_vm2 = vcmask 7168  }
 0x18b   : > { %1083 = vmatmul.mubr.msk.bf16.vlgmr.msra.gmra.mrb[4].mxu0 %vm399_vm3, %v1081_v54 }
 0x18c   : > { %593 = vmatpush1.bf16.msra.mxu0 %v587_v55  ;;  %624 = vmatprep.mubr.bf16.mxu0 %v1204_v0 }
 0x190   : > { %1098 = vmatmul.mubr.msk.bf16.vlgmr.msra.gmra.mrb[0].mxu1 %vm399_vm3, %v1096_v56 }
 0x191   : > { %915 = vmatpush1.bf16.msra.mxu1 %v909_v58  ;;  %946 = vmatprep.mubr.bf16.mxu1 %v1204_v0 }
 0x197   : > { %1086 = vmatmul.mubr.msk.bf16.vlgmr.msra.gmra.mrb[4].mxu0 %vm399_vm3, %v1084_v57 }
 0x19c   : > { %1101 = vmatmul.mubr.msk.bf16.vlgmr.msra.gmra.mrb[0].mxu1 %vm399_vm3, %v1099_v59  ;;  %vm976_vm3 = vcmask 15360  }
 0x26a   : > { %v626_v60 = vpop.f32.mrb[4].mxu0 }
 0x26b   : > { %v628_v61 = vpop.f32.mrb[5].mxu0 }
 0x26c   : > { %v630_v62 = vpop.f32.mrb[6].mxu0 }
 0x26d   : > { %v631_v63 = vpop.f32.mrb[7].mxu0 }
 0x26f   : > { %v948_v1 = vpop.f32.mrb[0].mxu1 }
 0x270   : > { %v1108_v2 = vadd.f32 %v948_v1, %v626_v60  ;;  %v950_v0 = vpop.f32.mrb[1].mxu1 }
 0x271   : > { %v1109_v3 = vadd.f32 %v950_v0, %v628_v61  ;;  %v952_v4 = vpop.f32.mrb[2].mxu1 }
 0x272   : > { %v953_v5 = vpop.f32.mrb[3].mxu1  ;;  %v969_v6 = vmul.f32 %v1108_v2, %v1108_v2 }
 0x273   : > { %v1107_v7 = vpack.c.bf16 %v1109_v3, %v1108_v2  ;;  %v966_v8 = vadd.f32 %v1109_v3, %v1108_v2  ;;  %v970_v9 = vmul.f32 %v1109_v3, %v1109_v3 }
 0x275   : > { %965 = vst [vmem:[%s258_s16] sm:$0xff] %v1107_v7  ;;  %967 = vadd.xlane.f32.xlu0 %v966_v8  ;;  %v971_v10 = vadd.f32 %v970_v9, %v969_v6 }
 0x277   : > { %972 = vadd.xlane.f32.xlu1 %v971_v10 }
 0x302   : > { %v968_v11 = vpop.xlane.xlu0 %967 }
 0x304   : > { %v973_v12 = vpop.xlane.xlu1 %972 }
 0x305   : > { %v975_v13 = vsel %vm974_vm2, %v968_v11, %v973_v12 }
 0x306   : > { %977 = vst.msk [vmem:[%s262_s18] sm:$0xff] %vm976_vm3, %v975_v13 }
 0x307 PF: > { %s17_s21 = sadd.s32 1, %s1202_s21  }
 0x308   : > { %p14_p4 = scmp.ge.s32.totalorder %s17_s21, 4  }
 0x30a   :  { %16 = sbr.rel (!%p14_p4) target bundleno = 1 (0x1), region = 90 }

</bundles_post_ra>
